<compile_context>
chip_gen: v7x
topology: tpu7x:2x2x1
jax: 0.10.0
libtpu: 0.0.40
codegen_flags: <defaults>
</compile_context>

<pallas_src>
import functools

import jax
import jax.numpy as jnp
from jax.experimental import pallas as pl
from jax.experimental.pallas import tpu as pltpu


def _round_up(x, m):
    return ((x + m - 1) // m) * m


# --------- pass 1: per-edge aggregation  Ye = (H^T @ (X W1 + b1)) @ W2b --------
def _edge_agg_kernel(ht_ref, x_ref, w1_ref, b1_ref, w2b_ref, ye_ref, acc_ref):
    # grid = (E_tiles, N_tiles); axis 1 (node tiles) is the reduction axis.
    @pl.when(pl.program_id(1) == 0)
    def _init():
        acc_ref[...] = jnp.zeros_like(acc_ref)

    h1 = (jnp.dot(x_ref[...], w1_ref[...], preferred_element_type=jnp.float32)
          + b1_ref[...])                                            # (tn, Fout)
    acc_ref[...] += jnp.dot(ht_ref[...], h1,
                            preferred_element_type=jnp.float32)     # (te, Fout)

    @pl.when(pl.program_id(1) == pl.num_programs(1) - 1)
    def _done():
        ye_ref[...] = jnp.dot(acc_ref[...], w2b_ref[...],
                              preferred_element_type=jnp.float32)


# --------- pass 2: per-vertex aggregation + residual mix + final linear -------
def _vertex_kernel(h_ref, ye_ref, x_ref, x0_ref, d_ref,
                   w2a_ref, b2_ref, w3_ref, b3_ref, out_ref, acc_ref, *, alpha):
    # grid = (N_tiles, E_tiles); axis 1 (edge tiles) is the reduction axis.
    @pl.when(pl.program_id(1) == 0)
    def _init():
        acc_ref[...] = jnp.zeros_like(acc_ref)

    acc_ref[...] += jnp.dot(h_ref[...], ye_ref[...],
                            preferred_element_type=jnp.float32)     # (tn, Fout)

    @pl.when(pl.program_id(1) == pl.num_programs(1) - 1)
    def _done():
        xw2a = (jnp.dot(x_ref[...], w2a_ref[...],
                        preferred_element_type=jnp.float32) + b2_ref[...])
        xv = d_ref[...] * xw2a + acc_ref[...]                       # deg-weighted
        xmix = (1.0 - alpha) * xv + alpha * x0_ref[...]
        out_ref[...] = (jnp.dot(xmix, w3_ref[...],
                                preferred_element_type=jnp.float32)
                        + b3_ref[...])


def fuzzy_equiv_set_conv(X, X0, vertex, edges, params, *, num_edges, alpha,
                         tile_n_cap=512, tile_e_cap=512):
    """X: [N, Fin], X0: [N, Fout], vertex/edges: [nnz] int32."""
    N, Fin = X.shape
    Fout = params["w1"].shape[1]
    f32 = jnp.float32

    Fin_p = _round_up(Fin, 128)
    Fout_p = _round_up(Fout, 128)
    tile_n = min(tile_n_cap, _round_up(N, 128))
    tile_e = min(tile_e_cap, _round_up(num_edges, 128))
    Np = _round_up(N, tile_n)
    Ep = _round_up(num_edges, tile_e)
    n_tiles = Np // tile_n
    e_tiles = Ep // tile_e

    def pad2(a, rows, cols):
        a = jnp.asarray(a, f32)
        return jnp.pad(a, ((0, rows - a.shape[0]), (0, cols - a.shape[1])))

    # Dense incidence multiplicity matrix and vertex degree, built once per
    # hypergraph in plain JAX (static across layers/iterations).
    v = vertex.astype(jnp.int32)
    e = edges.astype(jnp.int32)
    H = jnp.zeros((Np, Ep), f32).at[v, e].add(1.0)     # [Np, Ep]  multiplicity
    Ht = H.T                                           # [Ep, Np]  (built outside)
    D = jnp.sum(H, axis=1, keepdims=True)              # [Np, 1]   vertex degree

    Xp = pad2(X, Np, Fin_p)
    X0p = pad2(X0, Np, Fout_p)
    w1 = pad2(params["w1"], Fin_p, Fout_p)
    w2a = pad2(params["w2a"], Fin_p, Fout_p)
    w2b = pad2(params["w2b"], Fout_p, Fout_p)
    w3 = pad2(params["w3"], Fout_p, Fout_p)
    b1 = pad2(params["b1"].reshape(1, -1), 1, Fout_p)
    b2 = pad2(params["b2"].reshape(1, -1), 1, Fout_p)
    b3 = pad2(params["b3"].reshape(1, -1), 1, Fout_p)

    cparams = pltpu.CompilerParams(
        dimension_semantics=("parallel", "arbitrary"),
        vmem_limit_bytes=32 * 1024 * 1024)

    # ---- pass 1: Ye[e,:] = (sum_v H[v,e] * (X[v] W1 + b1)) W2b ----------------
    ye = pl.pallas_call(
        _edge_agg_kernel,
        out_shape=jax.ShapeDtypeStruct((Ep, Fout_p), f32),
        grid_spec=pltpu.PrefetchScalarGridSpec(
            num_scalar_prefetch=0,
            grid=(e_tiles, n_tiles),
            in_specs=[
                pl.BlockSpec((tile_e, tile_n), lambda ei, ni: (ei, ni)),   # H^T
                pl.BlockSpec((tile_n, Fin_p), lambda ei, ni: (ni, 0)),     # X
                pl.BlockSpec((Fin_p, Fout_p), lambda ei, ni: (0, 0)),      # W1
                pl.BlockSpec((1, Fout_p), lambda ei, ni: (0, 0)),          # b1
                pl.BlockSpec((Fout_p, Fout_p), lambda ei, ni: (0, 0)),     # W2b
            ],
            out_specs=pl.BlockSpec((tile_e, Fout_p), lambda ei, ni: (ei, 0)),
            scratch_shapes=[pltpu.VMEM((tile_e, Fout_p), f32)]),
        compiler_params=cparams,
        cost_estimate=pl.CostEstimate(
            flops=2 * (Np * Fin_p * Fout_p * e_tiles
                       + Ep * Np * Fout_p + Ep * Fout_p * Fout_p),
            transcendentals=0,
            bytes_accessed=4 * (Ep * Np + Np * Fin_p * e_tiles
                                + 2 * Ep * Fout_p + 2 * Fin_p * Fout_p)),
    )(Ht, Xp, w1, b1, w2b)

    # ---- pass 2: out = ((1-a)(D⊙(X W2a + b2) + H @ Ye) + a X0) W3 + b3 --------
    kernel2 = functools.partial(_vertex_kernel, alpha=float(alpha))
    out_p = pl.pallas_call(
        kernel2,
        out_shape=jax.ShapeDtypeStruct((Np, Fout_p), f32),
        grid_spec=pltpu.PrefetchScalarGridSpec(
            num_scalar_prefetch=0,
            grid=(n_tiles, e_tiles),
            in_specs=[
                pl.BlockSpec((tile_n, tile_e), lambda ni, ei: (ni, ei)),   # H
                pl.BlockSpec((tile_e, Fout_p), lambda ni, ei: (ei, 0)),    # Ye
                pl.BlockSpec((tile_n, Fin_p), lambda ni, ei: (ni, 0)),     # X
                pl.BlockSpec((tile_n, Fout_p), lambda ni, ei: (ni, 0)),    # X0
                pl.BlockSpec((tile_n, 1), lambda ni, ei: (ni, 0)),         # D
                pl.BlockSpec((Fin_p, Fout_p), lambda ni, ei: (0, 0)),      # W2a
                pl.BlockSpec((1, Fout_p), lambda ni, ei: (0, 0)),          # b2
                pl.BlockSpec((Fout_p, Fout_p), lambda ni, ei: (0, 0)),     # W3
                pl.BlockSpec((1, Fout_p), lambda ni, ei: (0, 0)),          # b3
            ],
            out_specs=pl.BlockSpec((tile_n, Fout_p), lambda ni, ei: (ni, 0)),
            scratch_shapes=[pltpu.VMEM((tile_n, Fout_p), f32)]),
        compiler_params=cparams,
        cost_estimate=pl.CostEstimate(
            flops=2 * (Np * Ep * Fout_p + Np * Fin_p * Fout_p
                       + Np * Fout_p * Fout_p),
            transcendentals=0,
            bytes_accessed=4 * (Np * Ep + Ep * Fout_p * n_tiles
                                + Np * (Fin_p + 3 * Fout_p)
                                + 2 * Fout_p * Fout_p + Fin_p * Fout_p)),
    )(H, ye, Xp, X0p, D, w2a, b2, w3, b3)

    return out_p[:N, :Fout]


def _reference(X, X0, vertex, edges, params, *, num_edges, alpha):
    """Pure-JAX reference mirroring the PyTorch forward."""
    N = X.shape[0]
    H1 = X @ params["w1"] + params["b1"]
    Xve = H1[vertex]
    Xe = jax.ops.segment_sum(Xve, edges, num_segments=num_edges)
    Xev = Xe[edges]
    Xev = X[vertex] @ params["w2a"] + Xev @ params["w2b"] + params["b2"]
    Xv = jax.ops.segment_sum(Xev, vertex, num_segments=N)
    Xmix = (1.0 - alpha) * Xv + alpha * X0
    return Xmix @ params["w3"] + params["b3"]


if __name__ == "__main__":
    # Small, deterministic problem.
    in_features = 32
    out_features = 32
    N = 16            # nodes
    E = 8             # hyperedges
    deg = 4           # incidences per edge
    nnz = E * deg     # 32
    alpha = 0.5

    key = jax.random.PRNGKey(0)
    keys = jax.random.split(key, 10)

    X = jax.random.normal(keys[0], (N, in_features), dtype=jnp.float32)
    X0 = jax.random.normal(keys[1], (N, out_features), dtype=jnp.float32)
    vertex = jax.random.randint(keys[2], (nnz,), 0, N, dtype=jnp.int32)
    edges = jnp.repeat(jnp.arange(E, dtype=jnp.int32), deg)

    scale = 0.1
    # Linear weights stored as [in, out] (i.e. torch Linear weight transposed).
    params = {
        "w1": scale * jax.random.normal(keys[3], (in_features, out_features), jnp.float32),
        "b1": scale * jax.random.normal(keys[4], (out_features,), jnp.float32),
        # W2 acts on concat([X[vertex] (Fin), Xev (Fout)]) -> split into two blocks.
        "w2a": scale * jax.random.normal(keys[5], (in_features, out_features), jnp.float32),
        "w2b": scale * jax.random.normal(keys[6], (out_features, out_features), jnp.float32),
        "b2": scale * jax.random.normal(keys[7], (out_features,), jnp.float32),
        "w3": scale * jax.random.normal(keys[8], (out_features, out_features), jnp.float32),
        "b3": scale * jax.random.normal(keys[9], (out_features,), jnp.float32),
    }

    out = fuzzy_equiv_set_conv(X, X0, vertex, edges, params,
                               num_edges=E, alpha=alpha)
    out = jax.block_until_ready(out)

    ref = _reference(X, X0, vertex, edges, params, num_edges=E, alpha=alpha)
    assert out.shape == (N, out_features)
    assert jnp.allclose(out, ref, atol=1e-4, rtol=1e-4), "mismatch vs reference"

    print("KERNEL_OK")
</pallas_src>

<mosaic_0001>
module attributes {stable_mosaic.version = 11 : i64} {
  func.func @_edge_agg_kernel(%arg0: i32, %arg1: i32, %arg2: memref<128x128xf32, #tpu.memory_space<vmem>>, %arg3: memref<128x128xf32, #tpu.memory_space<vmem>>, %arg4: memref<128x128xf32, #tpu.memory_space<vmem>>, %arg5: memref<1x128xf32, #tpu.memory_space<vmem>>, %arg6: memref<128x128xf32, #tpu.memory_space<vmem>>, %arg7: memref<128x128xf32, #tpu.memory_space<vmem>>, %arg8: memref<128x128xf32, #tpu.memory_space<vmem>>) attributes {dimension_semantics = [#tpu.dimension_semantics<parallel>, #tpu.dimension_semantics<arbitrary>], iteration_bounds = array<i64: 1, 1>, scalar_prefetch = 0 : i64, scratch_operands = 1 : i64, tpu.core_type = #tpu.core_type<tc>, window_params = [{transform_indices = @transform_0, window_bounds = array<i64: 128, 128>}, {transform_indices = @transform_1, window_bounds = array<i64: 128, 128>}, {pipeline_mode = #tpu.pipeline_mode<synchronous>, transform_indices = @transform_2, window_bounds = array<i64: 128, 128>}, {pipeline_mode = #tpu.pipeline_mode<synchronous>, transform_indices = @transform_3, window_bounds = array<i64: 1, 128>}, {pipeline_mode = #tpu.pipeline_mode<synchronous>, transform_indices = @transform_4, window_bounds = array<i64: 128, 128>}, {transform_indices = @transform_5, window_bounds = array<i64: 128, 128>}]} {
    %c0_i32 = arith.constant 0 : i32
    %0 = arith.cmpi eq, %arg1, %c0_i32 : i32
    %1 = arith.extui %0 : i1 to i32
    %c0_i32_0 = arith.constant 0 : i32
    %2 = arith.cmpi ne, %1, %c0_i32_0 : i32
    scf.if %2 {
      %cst_15 = arith.constant 0.000000e+00 : f32
      %17 = vector.broadcast %cst_15 : f32 to vector<128x128xf32>
      %c0_16 = arith.constant 0 : index
      %c0_17 = arith.constant 0 : index
      %18 = vector.load %arg8[%c0_16, %c0_17] : memref<128x128xf32, #tpu.memory_space<vmem>>, vector<128x128xf32>
      tpu.vector_store %arg8[%c0_16, %c0_17], %17 {strides = array<i32>} : memref<128x128xf32, #tpu.memory_space<vmem>>, vector<128x128xf32>,
    } else {
    }
    %c0 = arith.constant 0 : index
    %c0_1 = arith.constant 0 : index
    %3 = vector.load %arg3[%c0, %c0_1] : memref<128x128xf32, #tpu.memory_space<vmem>>, vector<128x128xf32>
    %c0_2 = arith.constant 0 : index
    %c0_3 = arith.constant 0 : index
    %4 = vector.load %arg4[%c0_2, %c0_3] : memref<128x128xf32, #tpu.memory_space<vmem>>, vector<128x128xf32>
    %cst = arith.constant dense<0.000000e+00> : vector<128x128xf32>
    %5 = tpu.matmul %3, %4, %cst {dimension_numbers = #tpu.dot_dimension_numbers<[1], [0], [0], [1], [0, 0, 1, 1], [], []>} : vector<128x128xf32>, vector<128x128xf32>, vector<128x128xf32> -> vector<128x128xf32>
    %c0_4 = arith.constant 0 : index
    %c0_5 = arith.constant 0 : index
    %6 = vector.load %arg5[%c0_4, %c0_5] : memref<1x128xf32, #tpu.memory_space<vmem>>, vector<1x128xf32>
    %7 = vector.broadcast %6 : vector<1x128xf32> to vector<128x128xf32>
    %8 = arith.addf %5, %7 : vector<128x128xf32>
    %c0_6 = arith.constant 0 : index
    %c0_7 = arith.constant 0 : index
    %9 = vector.load %arg8[%c0_6, %c0_7] : memref<128x128xf32, #tpu.memory_space<vmem>>, vector<128x128xf32>
    %c0_8 = arith.constant 0 : index
    %c0_9 = arith.constant 0 : index
    %10 = vector.load %arg2[%c0_8, %c0_9] : memref<128x128xf32, #tpu.memory_space<vmem>>, vector<128x128xf32>
    %cst_10 = arith.constant dense<0.000000e+00> : vector<128x128xf32>
    %11 = tpu.matmul %10, %8, %cst_10 {dimension_numbers = #tpu.dot_dimension_numbers<[1], [0], [0], [1], [0, 0, 1, 1], [], []>} : vector<128x128xf32>, vector<128x128xf32>, vector<128x128xf32> -> vector<128x128xf32>
    %12 = arith.addf %9, %11 : vector<128x128xf32>
    %c0_11 = arith.constant 0 : index
    %c0_12 = arith.constant 0 : index
    %13 = vector.load %arg8[%c0_11, %c0_12] : memref<128x128xf32, #tpu.memory_space<vmem>>, vector<128x128xf32>
    tpu.vector_store %arg8[%c0_11, %c0_12], %12 {strides = array<i32>} : memref<128x128xf32, #tpu.memory_space<vmem>>, vector<128x128xf32>,
    %c0_i32_13 = arith.constant 0 : i32
    %14 = arith.cmpi eq, %arg1, %c0_i32_13 : i32
    %15 = arith.extui %14 : i1 to i32
    %c0_i32_14 = arith.constant 0 : i32
    %16 = arith.cmpi ne, %15, %c0_i32_14 : i32
    scf.if %16 {
      %c0_15 = arith.constant 0 : index
      %c0_16 = arith.constant 0 : index
      %17 = vector.load %arg8[%c0_15, %c0_16] : memref<128x128xf32, #tpu.memory_space<vmem>>, vector<128x128xf32>
      %c0_17 = arith.constant 0 : index
      %c0_18 = arith.constant 0 : index
      %18 = vector.load %arg6[%c0_17, %c0_18] : memref<128x128xf32, #tpu.memory_space<vmem>>, vector<128x128xf32>
      %cst_19 = arith.constant dense<0.000000e+00> : vector<128x128xf32>
      %19 = tpu.matmul %17, %18, %cst_19 {dimension_numbers = #tpu.dot_dimension_numbers<[1], [0], [0], [1], [0, 0, 1, 1], [], []>} : vector<128x128xf32>, vector<128x128xf32>, vector<128x128xf32> -> vector<128x128xf32>
      %c0_20 = arith.constant 0 : index
      %c0_21 = arith.constant 0 : index
      %20 = vector.load %arg7[%c0_20, %c0_21] : memref<128x128xf32, #tpu.memory_space<vmem>>, vector<128x128xf32>
      tpu.vector_store %arg7[%c0_20, %c0_21], %19 {strides = array<i32>} : memref<128x128xf32, #tpu.memory_space<vmem>>, vector<128x128xf32>,
    } else {
    }
    return
  }
  func.func @transform_0(%arg0: i32, %arg1: i32) -> (i32, i32) {
    %c0_i32 = arith.constant 0 : i32
    return %arg0, %arg1 : i32, i32
  }
  func.func @transform_1(%arg0: i32, %arg1: i32) -> (i32, i32) {
    %c0_i32 = arith.constant 0 : i32
    %c0_i32_0 = arith.constant 0 : i32
    return %arg1, %c0_i32 : i32, i32
  }
  func.func @transform_2(%arg0: i32, %arg1: i32) -> (i32, i32) {
    %c0_i32 = arith.constant 0 : i32
    %c0_i32_0 = arith.constant 0 : i32
    %c0_i32_1 = arith.constant 0 : i32
    return %c0_i32, %c0_i32_0 : i32, i32
  }
  func.func @transform_3(%arg0: i32, %arg1: i32) -> (i32, i32) {
    %c0_i32 = arith.constant 0 : i32
    %c0_i32_0 = arith.constant 0 : i32
    %c0_i32_1 = arith.constant 0 : i32
    return %c0_i32, %c0_i32_0 : i32, i32
  }
  func.func @transform_4(%arg0: i32, %arg1: i32) -> (i32, i32) {
    %c0_i32 = arith.constant 0 : i32
    %c0_i32_0 = arith.constant 0 : i32
    %c0_i32_1 = arith.constant 0 : i32
    return %c0_i32, %c0_i32_0 : i32, i32
  }
  func.func @transform_5(%arg0: i32, %arg1: i32) -> (i32, i32) {
    %c0_i32 = arith.constant 0 : i32
    %c0_i32_0 = arith.constant 0 : i32
    return %arg0, %c0_i32 : i32, i32
  }
}

</mosaic_0001>

<bundles_post_ra>
// kernel: tpu_custom_call.1
= control target key start
LH: loop header
LB: loop body
LE: loop exit
PB: predicated region body
PF: predicated region fallthrough
CT: control target
= control target key end

     0   :  { %10 = vsyncpa [#allocation4], 0  ;;  %s1383_s0 = inlined_call_operand.hbm [shape: f32[128,128], index: 0, kind: input, shape index: {}]   ;;  %s1384_s1 = inlined_call_operand.hbm [shape: f32[128,128], index: 1, kind: input, shape index: {}]   ;;  %s1385_s2 = inlined_call_operand.hbm [shape: f32[128,128], index: 2, kind: input, shape index: {}]   ;;  %s1386_s3 = inlined_call_operand.vmem [shape: f32[1,128], index: 3, kind: input, shape index: {}]   ;;  %s1387_s4 = inlined_call_operand.hbm [shape: f32[128,128], index: 4, kind: input, shape index: {}]   ;;  %s1388_s5 = inlined_call_operand.hbm [shape: f32[128,128], index: 5, kind: output, shape index: {}]  }
   0x1   :  { %11 = vsyncpa [#allocation7], 0 }
   0x2   :  { %12 = vsyncpa [#allocation10], 0 }
   0x3   :  { %13 = vsyncpa [#allocation5], 0  ;;  %s1206_s18 = smov [#allocation6]   ;;  %s1207_s20 = smov [#allocation3]  }
   0x4   :  { %s31_s19 = sshll.u32 %s1206_s18, 4  ;;  %s19_s21 = sshll.u32 %s1207_s20, 4  ;;  %s32_s19 = int_to_ptr.vmem [resolvable:$true] %s31_s19  ;;  %s1243_s21 = int_to_ptr.vmem [resolvable:$true] %s19_s21 }
   0x5   :  { %s1088_s24 = scalar_lea.hbm %s1384_s1, 2048 }
   0x6   :  { %p1089_p0 = scmp.ne.s32.totalorder %s1384_s1, %s1088_s24  ;;  %p1092_p1 = scmp.lt.u32.totalorder %s1088_s24, %s1384_s1 }
   0x8   :  { %p1094_p2 = pnand %p1092_p1, %p1089_p0 }
   0xa   :  { %1097 = shalt.err (!%p1094_p2)
}
   0xb   :  { %s1098_s29 = scalar_lea.vmem %s32_s19, 2048  ;;  %p1103_p4 = scmp.lt.s32.totalorder %s32_s19, %s32_s19 }
   0xc   :  { %p1099_p3 = scmp.ne.s32.totalorder %s32_s19, %s1098_s29  ;;  %p1104_p5 = scmp.lt.s32.totalorder %s1098_s29, %s1098_s29 }
   0xe   :  { %p1105_p6 = por %p1104_p5, %p1103_p4 }
  0x10   :  { %p1106_p7 = pnand %p1105_p6, %p1099_p3 }
  0x12   :  { %1109 = shalt.err (!%p1106_p7)
}
  0x13   :  { %s1208_s30 = smov 128   ;;  %s1209_s6 = smov 8  }
  0x14   :  { %37 = dma.hbm_to_vmem [thread:$0]  %s1384_s1, 2048, %s32_s19, [#allocation7], %s1208_s30, %s1208_s30, %s1209_s6  }
  0x15   :  { %s1110_s11 = scalar_lea.hbm %s1383_s0, 2048 }
  0x16   :  { %p1111_p8 = scmp.ne.s32.totalorder %s1383_s0, %s1110_s11  ;;  %p1114_p9 = scmp.lt.u32.totalorder %s1110_s11, %s1383_s0 }
  0x18   :  { %p1116_p10 = pnand %p1114_p9, %p1111_p8 }
  0x1a   :  { %1119 = shalt.err (!%p1116_p10)
}
  0x1b   :  { %s1120_s16 = scalar_lea.vmem %s1243_s21, 2048  ;;  %p1125_p12 = scmp.lt.s32.totalorder %s1243_s21, %s1243_s21 }
  0x1c   :  { %p1121_p11 = scmp.ne.s32.totalorder %s1243_s21, %s1120_s16  ;;  %p1126_p13 = scmp.lt.s32.totalorder %s1120_s16, %s1120_s16 }
  0x1e   :  { %p1127_p0 = por %p1126_p13, %p1125_p12 }
  0x20   :  { %p1128_p1 = pnand %p1127_p0, %p1121_p11 }
  0x22   :  { %1131 = shalt.err (!%p1128_p1)
}
  0x23   :  { %25 = dma.hbm_to_vmem [thread:$0]  %s1383_s0, 2048, %s1243_s21, [#allocation4], %s1208_s30, %s1208_s30, %s1209_s6  }
  0x24   :  { %s1210_s18 = smov [#allocation8]   ;;  %s1211_s20 = smov [#allocation9]  }
  0x25   :  { %s43_s19 = sshll.u32 %s1210_s18, 4  ;;  %s57_s22 = sshll.u32 %s1211_s20, 4  ;;  %s44_s19 = int_to_ptr.vmem [resolvable:$true] %s43_s19  ;;  %s1280_s22 = int_to_ptr.vmem [resolvable:$true] %s57_s22 }
  0x26   :  { %s1132_s25 = scalar_lea.hbm %s1385_s2, 2048 }
  0x27   :  { %p1133_p2 = scmp.ne.s32.totalorder %s1385_s2, %s1132_s25  ;;  %p1136_p3 = scmp.lt.u32.totalorder %s1132_s25, %s1385_s2 }
  0x29   :  { %p1138_p4 = pnand %p1136_p3, %p1133_p2 }
  0x2b   :  { %1141 = shalt.err (!%p1138_p4)
}
  0x2c   :  { %s1142_s0 = scalar_lea.vmem %s44_s19, 2048  ;;  %p1147_p6 = scmp.lt.s32.totalorder %s44_s19, %s44_s19 }
  0x2d   :  { %p1143_p5 = scmp.ne.s32.totalorder %s44_s19, %s1142_s0  ;;  %p1148_p7 = scmp.lt.s32.totalorder %s1142_s0, %s1142_s0 }
  0x2f   :  { %p1149_p8 = por %p1148_p7, %p1147_p6 }
  0x31   :  { %p1150_p9 = pnand %p1149_p8, %p1143_p5 }
  0x33   :  { %1153 = shalt.err (!%p1150_p9)
}
  0x34   :  { %49 = dma.hbm_to_vmem [thread:$0]  %s1385_s2, 2048, %s44_s19, [#allocation7], %s1208_s30, %s1208_s30, %s1209_s6  }
  0x35   :  { %s1154_s10 = scalar_lea.hbm %s1387_s4, 2048 }
  0x36   :  { %p1155_p10 = scmp.ne.s32.totalorder %s1387_s4, %s1154_s10  ;;  %p1158_p11 = scmp.lt.u32.totalorder %s1154_s10, %s1387_s4 }
  0x38   :  { %p1160_p12 = pnand %p1158_p11, %p1155_p10 }
  0x3a   :  { %1163 = shalt.err (!%p1160_p12)
}
  0x3b   :  { %s1164_s15 = scalar_lea.vmem %s1280_s22, 2048  ;;  %p1169_p0 = scmp.lt.s32.totalorder %s1280_s22, %s1280_s22 }
  0x3c   :  { %p1165_p13 = scmp.ne.s32.totalorder %s1280_s22, %s1164_s15  ;;  %p1170_p1 = scmp.lt.s32.totalorder %s1164_s15, %s1164_s15 }
  0x3e   :  { %p1171_p2 = por %p1170_p1, %p1169_p0 }
  0x40   :  { %p1172_p3 = pnand %p1171_p2, %p1165_p13 }
  0x42   :  { %1175 = shalt.err (!%p1172_p3)
}
  0x43   :  { %63 = dma.hbm_to_vmem [thread:$0]  %s1387_s4, 2048, %s1280_s22, [#allocation10], %s1208_s30, %s1208_s30, %s1209_s6  }
  0x44   :  { %1198 = dma.done.wait [#allocation4], 2048  }
  0x45   :  { %1199 = vsyncadd [#allocation4], 4294965248 }
  0x46   :  { %1200 = dma.done.wait [#allocation7], 4096  }
  0x47   :  { %1201 = vsyncadd [#allocation7], 4294963200 }
  0x48   :  { %1202 = dma.done.wait [#allocation10], 2048  }
  0x49   :  { %1203 = vsyncadd [#allocation10], 4294965248  ;;  %v112_v0 = vld [vmem:[#allocation8] sm:$0xff]  ;;  %v113_v1 = vld [vmem:[#allocation8 + $0x8] sm:$0xff] }
  0x4a   :  { %v114_v2 = vld [vmem:[#allocation8 + $0x10] sm:$0xff]  ;;  %v969_v3 = vpack.c.bf16 %v113_v1, %v112_v0  ;;  %v115_v4 = vld [vmem:[#allocation8 + $0x18] sm:$0xff]  ;;  %v116_v6 = vld [vmem:[#allocation8 + $0x20] sm:$0xff] }
  0x4b   :  { %v973_v5 = vpack.c.bf16 %v115_v4, %v114_v2  ;;  %v117_v7 = vld [vmem:[#allocation8 + $0x28] sm:$0xff]  ;;  %v96_v9 = vld [vmem:[#allocation6] sm:$0xff]  ;;  %v118_v10 = vld [vmem:[#allocation8 + $0x30] sm:$0xff] }
  0x4c   :  { %970 = vmatprep.subr.bf16.mxu0 %v969_v3  ;;  %v977_v8 = vpack.c.bf16 %v117_v7, %v116_v6  ;;  %v119_v11 = vld [vmem:[#allocation8 + $0x38] sm:$0xff]  ;;  %833 = vmatprep.mubr.f32.mxu0 %v96_v9  ;;  %v120_v13 = vld [vmem:[#allocation8 + $0x40] sm:$0xff]  ;;  %v121_v14 = vld [vmem:[#allocation8 + $0x48] sm:$0xff] }
  0x4d   :  { %972 = vmatpush3.bf16.msra.mxu0 %v969_v3  ;;  %v981_v12 = vpack.c.bf16 %v119_v11, %v118_v10  ;;  %v985_v15 = vpack.c.bf16 %v121_v14, %v120_v13  ;;  %v122_v16 = vld [vmem:[#allocation8 + $0x50] sm:$0xff]  ;;  %v123_v17 = vld [vmem:[#allocation8 + $0x58] sm:$0xff]  ;;  %v124_v19 = vld [vmem:[#allocation8 + $0x60] sm:$0xff] }
  0x4e   :  { %974 = vmatprep.subr.bf16.mxu0 %v973_v5  ;;  %v989_v18 = vpack.c.bf16 %v123_v17, %v122_v16  ;;  %v125_v20 = vld [vmem:[#allocation8 + $0x68] sm:$0xff]  ;;  %v126_v22 = vld [vmem:[#allocation8 + $0x70] sm:$0xff]  ;;  %v127_v23 = vld [vmem:[#allocation8 + $0x78] sm:$0xff] }
  0x4f   :  { %v993_v21 = vpack.c.bf16 %v125_v20, %v124_v19  ;;  %v997_v24 = vpack.c.bf16 %v127_v23, %v126_v22  ;;  %v97_v25 = vld [vmem:[#allocation6 + $0x8] sm:$0xff]  ;;  %v98_v26 = vld [vmem:[#allocation6 + $0x10] sm:$0xff]  ;;  %v99_v27 = vld [vmem:[#allocation6 + $0x18] sm:$0xff] }
  0x50   :  { %v100_v28 = vld [vmem:[#allocation6 + $0x20] sm:$0xff]  ;;  %v101_v29 = vld [vmem:[#allocation6 + $0x28] sm:$0xff]  ;;  %v102_v30 = vld [vmem:[#allocation6 + $0x30] sm:$0xff] }
  0x51   :  { %976 = vmatpush3.bf16.msra.mxu0 %v973_v5  ;;  %v103_v31 = vld [vmem:[#allocation6 + $0x38] sm:$0xff]  ;;  %v104_v32 = vld [vmem:[#allocation6 + $0x40] sm:$0xff]  ;;  %v105_v33 = vld [vmem:[#allocation6 + $0x48] sm:$0xff] }
  0x52   :  { %978 = vmatprep.subr.bf16.mxu0 %v977_v8  ;;  %v106_v34 = vld [vmem:[#allocation6 + $0x50] sm:$0xff]  ;;  %v107_v35 = vld [vmem:[#allocation6 + $0x58] sm:$0xff]  ;;  %v108_v36 = vld [vmem:[#allocation6 + $0x60] sm:$0xff] }
  0x53   :  { %v109_v37 = vld [vmem:[#allocation6 + $0x68] sm:$0xff]  ;;  %v110_v38 = vld [vmem:[#allocation6 + $0x70] sm:$0xff]  ;;  %v111_v39 = vld [vmem:[#allocation6 + $0x78] sm:$0xff] }
  0x54   :  { %v296_v40 = vld [vmem:[#allocation3] sm:$0xff]  ;;  %v509_v42 = vld [vmem:[#allocation9 + $0x8] sm:$0xff]  ;;  %v510_v43 = vld [vmem:[#allocation9 + $0x10] sm:$0xff] }
  0x55   :  { %980 = vmatpush3.bf16.msra.mxu0 %v977_v8  ;;  %889 = vmatprep.mubr.f32.mxu1 %v296_v40  ;;  %v508_v41 = vld [vmem:[#allocation9] sm:$0xff]  ;;  %v511_v45 = vld [vmem:[#allocation9 + $0x18] sm:$0xff]  ;;  %v513_v48 = vld [vmem:[#allocation9 + $0x28] sm:$0xff] }
  0x56   :  { %982 = vmatprep.subr.bf16.mxu0 %v981_v12  ;;  %v1317_v44 = vpack.c.bf16 %v509_v42, %v508_v41  ;;  %v1319_v46 = vpack.c.bf16 %v511_v45, %v510_v43  ;;  %v512_v47 = vld [vmem:[#allocation9 + $0x20] sm:$0xff]  ;;  %v514_v50 = vld [vmem:[#allocation9 + $0x30] sm:$0xff]  ;;  %v515_v51 = vld [vmem:[#allocation9 + $0x38] sm:$0xff] }
  0x57   :  { %v1324_v49 = vpack.c.bf16 %v513_v48, %v512_v47  ;;  %v1328_v52 = vpack.c.bf16 %v515_v51, %v514_v50  ;;  %v516_v53 = vld [vmem:[#allocation9 + $0x40] sm:$0xff]  ;;  %v517_v54 = vld [vmem:[#allocation9 + $0x48] sm:$0xff]  ;;  %v518_v56 = vld [vmem:[#allocation9 + $0x50] sm:$0xff] }
  0x58   :  { %v1332_v55 = vpack.c.bf16 %v517_v54, %v516_v53  ;;  %v519_v57 = vld [vmem:[#allocation9 + $0x58] sm:$0xff]  ;;  %v520_v59 = vld [vmem:[#allocation9 + $0x60] sm:$0xff]  ;;  %v521_v60 = vld [vmem:[#allocation9 + $0x68] sm:$0xff] }
  0x59   :  { %984 = vmatpush3.bf16.msra.mxu0 %v981_v12  ;;  %v1336_v58 = vpack.c.bf16 %v519_v57, %v518_v56  ;;  %v1340_v61 = vpack.c.bf16 %v521_v60, %v520_v59  ;;  %v522_v62 = vld [vmem:[#allocation9 + $0x70] sm:$0xff]  ;;  %v523_v63 = vld [vmem:[#allocation9 + $0x78] sm:$0xff]  ;;  %v704_v1 = vld [vmem:[%s1386_s3] ss:$0 sm:$0xff]  ;;  %s1212_s3 = smov [#allocation11]  }
  0x5a   :  { %986 = vmatprep.subr.bf16.mxu0 %v985_v15  ;;  %v1344_v0 = vpack.c.bf16 %v523_v63, %v522_v62  ;;  %v297_v42 = vld [vmem:[#allocation3 + $0x8] sm:$0xff]  ;;  %v298_v43 = vld [vmem:[#allocation3 + $0x10] sm:$0xff]  ;;  %v299_v45 = vld [vmem:[#allocation3 + $0x18] sm:$0xff]  ;;  %s690_s17 = sshll.u32 %s1212_s3, 4  ;;  %s691_s17 = int_to_ptr.vmem [resolvable:$true] %s690_s17 }
  0x5b   :  { %v300_v47 = vld [vmem:[#allocation3 + $0x20] sm:$0xff]  ;;  %v301_v48 = vld [vmem:[#allocation3 + $0x28] sm:$0xff]  ;;  %v302_v50 = vld [vmem:[#allocation3 + $0x30] sm:$0xff]  ;;  %s1176_s18 = scalar_lea.vmem %s691_s17, 2048  ;;  %p1181_p5 = scmp.lt.s32.totalorder %s691_s17, %s691_s17 }
  0x5c   :  { %v303_v51 = vld [vmem:[#allocation3 + $0x38] sm:$0xff]  ;;  %v304_v53 = vld [vmem:[#allocation3 + $0x40] sm:$0xff]  ;;  %v306_v54 = vld [vmem:[#allocation3 + $0x50] sm:$0xff]  ;;  %p1177_p4 = scmp.ne.s32.totalorder %s691_s17, %s1176_s18  ;;  %p1182_p6 = scmp.lt.s32.totalorder %s1176_s18, %s1176_s18 }
  0x5d   :  { %988 = vmatpush3.bf16.msra.mxu0 %v985_v15  ;;  %v308_v56 = vld [vmem:[#allocation3 + $0x60] sm:$0xff]  ;;  %v310_v57 = vld [vmem:[#allocation3 + $0x70] sm:$0xff] }
  0x5e   :  { %990 = vmatprep.subr.bf16.mxu0 %v989_v18  ;;  %p1183_p7 = por %p1182_p6, %p1181_p5 }
  0x60   :  { %p1184_p8 = pnand %p1183_p7, %p1177_p4 }
  0x61   :  { %992 = vmatpush3.bf16.msra.mxu0 %v989_v18 }
  0x62   :  { %994 = vmatprep.subr.bf16.mxu0 %v993_v21 }
  0x65   :  { %996 = vmatpush3.bf16.msra.mxu0 %v993_v21 }
  0x66   :  { %998 = vmatprep.subr.bf16.mxu0 %v997_v24 }
  0x69   :  { %1000 = vmatpush3.bf16.msra.mxu0 %v997_v24 }
  0x6a   :  { %1034 = vmatprep.subr.bf16.mxu0 %v1317_v44 }
  0x6c   :  { %834 = vmatmul.mubr.f32.vlgmr.msra.gmra.mrb[0].mxu0 %v97_v25 }
  0x6d   :  { %836 = vmatprep.mubr.f32.mxu0 %v98_v26  ;;  %1036 = vmatpush3.bf16.msra.mxu0 %v1317_v44 }
  0x6e   :  { %1038 = vmatprep.subr.bf16.mxu0 %v1319_v46 }
  0x70   :  { %837 = vmatmul.mubr.f32.gmra.mrb[2].mxu0 %v99_v27 }
  0x71   :  { %839 = vmatprep.mubr.f32.mxu0 %v100_v28  ;;  %1040 = vmatpush3.bf16.msra.mxu0 %v1319_v46 }
  0x72   :  { %1042 = vmatprep.subr.bf16.mxu0 %v1324_v49 }
  0x74   :  { %840 = vmatmul.mubr.f32.gmra.mrb[4].mxu0 %v101_v29 }
  0x75   :  { %842 = vmatprep.mubr.f32.mxu0 %v102_v30  ;;  %1044 = vmatpush3.bf16.msra.mxu0 %v1324_v49 }
  0x76   :  { %1046 = vmatprep.subr.bf16.mxu0 %v1328_v52 }
  0x78   :  { %843 = vmatmul.mubr.f32.gmra.mrb[6].mxu0 %v103_v31 }
  0x79   :  { %845 = vmatprep.mubr.f32.mxu0 %v104_v32  ;;  %1048 = vmatpush3.bf16.msra.mxu0 %v1328_v52 }
  0x7a   :  { %1050 = vmatprep.subr.bf16.mxu0 %v1332_v55 }
  0x7c   :  { %846 = vmatmul.mubr.f32.gmra.mrb[8].mxu0 %v105_v33 }
  0x7d   :  { %848 = vmatprep.mubr.f32.mxu0 %v106_v34  ;;  %1052 = vmatpush3.bf16.msra.mxu0 %v1332_v55 }
  0x7e   :  { %1054 = vmatprep.subr.bf16.mxu0 %v1336_v58 }
  0x80   :  { %849 = vmatmul.mubr.f32.gmra.mrb[10].mxu0 %v107_v35 }
  0x81   :  { %851 = vmatprep.mubr.f32.mxu0 %v108_v36  ;;  %1056 = vmatpush3.bf16.msra.mxu0 %v1336_v58 }
  0x82   :  { %1058 = vmatprep.subr.bf16.mxu0 %v1340_v61 }
  0x84   :  { %852 = vmatmul.mubr.f32.gmra.mrb[12].mxu0 %v109_v37 }
  0x85   :  { %854 = vmatprep.mubr.f32.mxu0 %v110_v38  ;;  %1060 = vmatpush3.bf16.msra.mxu0 %v1340_v61 }
  0x86   :  { %1062 = vmatprep.subr.bf16.mxu0 %v1344_v0 }
  0x88   :  { %855 = vmatmul.mubr.f32.gmra.mrb[14].mxu0 %v111_v39 }
  0x89   :  { %1064 = vmatpush3.bf16.msra.mxu0 %v1344_v0 }
 0x13f   :  { %v835_v2 = vpop.f32.mrb[0].mxu0 }
 0x140   :  { %v207_v3 = vadd.f32 %v835_v2, %v704_v1  ;;  %v201_v4 = vpop.f32.mrb[1].mxu0 }
 0x141   :  { %v202_v5 = vadd.f32 %v704_v1, %v201_v4 }
 0x143   :  { %v838_v6 = vpop.f32.mrb[2].mxu0  ;;  %v1001_v7 = vpack.c.bf16 %v207_v3, %v202_v5 }
 0x144   :  { %v217_v8 = vadd.f32 %v838_v6, %v704_v1  ;;  %v211_v9 = vpop.f32.mrb[3].mxu0 }
 0x145   :  { %v212_v10 = vadd.f32 %v704_v1, %v211_v9  ;;  %1002 = vmatprep.subr.bf16.mxu1 %v1001_v7 }
 0x146   :  { %1004 = vmatpush3.bf16.msra.mxu1 %v1001_v7 }
 0x147   :  { %v1005_v11 = vpack.c.bf16 %v217_v8, %v212_v10  ;;  %v841_v12 = vpop.f32.mrb[4].mxu0 }
 0x148   :  { %v227_v13 = vadd.f32 %v841_v12, %v704_v1  ;;  %v221_v14 = vpop.f32.mrb[5].mxu0 }
 0x149   :  { %v222_v15 = vadd.f32 %v704_v1, %v221_v14  ;;  %1006 = vmatprep.subr.bf16.mxu1 %v1005_v11 }
 0x14a   :  { %1008 = vmatpush3.bf16.msra.mxu1 %v1005_v11 }
 0x14b   :  { %v1009_v16 = vpack.c.bf16 %v227_v13, %v222_v15  ;;  %v844_v17 = vpop.f32.mrb[6].mxu0 }
 0x14c   :  { %v237_v18 = vadd.f32 %v844_v17, %v704_v1  ;;  %v231_v19 = vpop.f32.mrb[7].mxu0 }
 0x14d   :  { %v232_v20 = vadd.f32 %v704_v1, %v231_v19  ;;  %1010 = vmatprep.subr.bf16.mxu1 %v1009_v16 }
 0x14e   :  { %1012 = vmatpush3.bf16.msra.mxu1 %v1009_v16 }
 0x14f   :  { %v1013_v21 = vpack.c.bf16 %v237_v18, %v232_v20  ;;  %v847_v22 = vpop.f32.mrb[8].mxu0 }
 0x150   :  { %v247_v23 = vadd.f32 %v847_v22, %v704_v1  ;;  %v241_v24 = vpop.f32.mrb[9].mxu0 }
 0x151   :  { %v242_v25 = vadd.f32 %v704_v1, %v241_v24  ;;  %1014 = vmatprep.subr.bf16.mxu1 %v1013_v21 }
 0x152   :  { %1016 = vmatpush3.bf16.msra.mxu1 %v1013_v21 }
 0x153   :  { %v1017_v26 = vpack.c.bf16 %v247_v23, %v242_v25  ;;  %v850_v27 = vpop.f32.mrb[10].mxu0 }
 0x154   :  { %v257_v28 = vadd.f32 %v850_v27, %v704_v1  ;;  %v251_v29 = vpop.f32.mrb[11].mxu0 }
 0x155   :  { %v252_v30 = vadd.f32 %v704_v1, %v251_v29  ;;  %1018 = vmatprep.subr.bf16.mxu1 %v1017_v26 }
 0x156   :  { %1020 = vmatpush3.bf16.msra.mxu1 %v1017_v26 }
 0x157   :  { %v1021_v31 = vpack.c.bf16 %v257_v28, %v252_v30  ;;  %v853_v32 = vpop.f32.mrb[12].mxu0 }
 0x158   :  { %v267_v33 = vadd.f32 %v853_v32, %v704_v1  ;;  %v261_v34 = vpop.f32.mrb[13].mxu0 }
 0x159   :  { %v262_v35 = vadd.f32 %v704_v1, %v261_v34  ;;  %1022 = vmatprep.subr.bf16.mxu1 %v1021_v31 }
 0x15a   :  { %1024 = vmatpush3.bf16.msra.mxu1 %v1021_v31 }
 0x15b   :  { %v1025_v36 = vpack.c.bf16 %v267_v33, %v262_v35  ;;  %v856_v37 = vpop.f32.mrb[14].mxu0 }
 0x15c   :  { %v277_v38 = vadd.f32 %v856_v37, %v704_v1  ;;  %v271_v39 = vpop.f32.mrb[15].mxu0 }
 0x15d   :  { %v272_v40 = vadd.f32 %v704_v1, %v271_v39  ;;  %1026 = vmatprep.subr.bf16.mxu1 %v1025_v36 }
 0x15e   :  { %1028 = vmatpush3.bf16.msra.mxu1 %v1025_v36 }
 0x15f   :  { %v1029_v41 = vpack.c.bf16 %v277_v38, %v272_v40 }
 0x161   :  { %1030 = vmatprep.subr.bf16.mxu1 %v1029_v41 }
 0x162   :  { %1032 = vmatpush3.bf16.msra.mxu1 %v1029_v41 }
 0x163   :  { %1065 = vmatprep.subr.bf16.mxu1 %v1317_v44 }
 0x165   :  { %890 = vmatmul.mubr.f32.vlgmr.msra.gmra.mrb[0].mxu1 %v297_v42 }
 0x166   :  { %892 = vmatprep.mubr.f32.mxu1 %v298_v43  ;;  %1073 = vmatpush3.bf16.msra.mxu1 %v1317_v44  ;;  %v305_v44 = vld [vmem:[#allocation3 + $0x48] sm:$0xff] }
 0x167   :  { %1066 = vmatprep.subr.bf16.mxu1 %v1319_v46 }
 0x169   :  { %893 = vmatmul.mubr.f32.gmra.mrb[2].mxu1 %v299_v45 }
 0x16a   :  { %895 = vmatprep.mubr.f32.mxu1 %v300_v47  ;;  %1074 = vmatpush3.bf16.msra.mxu1 %v1319_v46  ;;  %v307_v46 = vld [vmem:[#allocation3 + $0x58] sm:$0xff] }
 0x16b   :  { %1067 = vmatprep.subr.bf16.mxu1 %v1324_v49 }
 0x16d   :  { %896 = vmatmul.mubr.f32.gmra.mrb[4].mxu1 %v301_v48 }
 0x16e   :  { %898 = vmatprep.mubr.f32.mxu1 %v302_v50  ;;  %1075 = vmatpush3.bf16.msra.mxu1 %v1324_v49  ;;  %v309_v49 = vld [vmem:[#allocation3 + $0x68] sm:$0xff] }
 0x16f   :  { %1068 = vmatprep.subr.bf16.mxu1 %v1328_v52 }
 0x171   :  { %899 = vmatmul.mubr.f32.gmra.mrb[6].mxu1 %v303_v51 }
 0x172   :  { %901 = vmatprep.mubr.f32.mxu1 %v304_v53  ;;  %1076 = vmatpush3.bf16.msra.mxu1 %v1328_v52  ;;  %v311_v52 = vld [vmem:[#allocation3 + $0x78] sm:$0xff] }
 0x173   :  { %1069 = vmatprep.subr.bf16.mxu1 %v1332_v55 }
 0x175   :  { %902 = vmatmul.mubr.f32.gmra.mrb[8].mxu1 %v305_v44 }
 0x176   :  { %904 = vmatprep.mubr.f32.mxu1 %v306_v54  ;;  %1077 = vmatpush3.bf16.msra.mxu1 %v1332_v55 }
 0x177   :  { %1070 = vmatprep.subr.bf16.mxu1 %v1336_v58 }
 0x179   :  { %905 = vmatmul.mubr.f32.gmra.mrb[10].mxu1 %v307_v46 }
 0x17a   :  { %907 = vmatprep.mubr.f32.mxu1 %v308_v56  ;;  %1078 = vmatpush3.bf16.msra.mxu1 %v1336_v58 }
 0x17b   :  { %1071 = vmatprep.subr.bf16.mxu1 %v1340_v61 }
 0x17d   :  { %908 = vmatmul.mubr.f32.gmra.mrb[12].mxu1 %v309_v49 }
 0x17e   :  { %910 = vmatprep.mubr.f32.mxu1 %v310_v57  ;;  %1079 = vmatpush3.bf16.msra.mxu1 %v1340_v61 }
 0x17f   :  { %1072 = vmatprep.subr.bf16.mxu1 %v1344_v0 }
 0x181   :  { %911 = vmatmul.mubr.f32.gmra.mrb[14].mxu1 %v311_v52 }
 0x182   :  { %1080 = vmatpush3.bf16.msra.mxu1 %v1344_v0 }
 0x238   :  { %v891_v55 = vpop.f32.mrb[0].mxu1 }
 0x239   :  { %v378_v59 = vpop.f32.mrb[1].mxu1 }
 0x23a   :  { %945 = vmatprep.mubr.f32.mxu0 %v378_v59 }
 0x23b   :  { %946 = vmatmul.mubr.f32.vlgmr.msra.gmra.mrb[16].mxu0 %v891_v55 }
 0x23c   :  { %v894_v60 = vpop.f32.mrb[2].mxu1 }
 0x23d   :  { %v388_v62 = vpop.f32.mrb[3].mxu1 }
 0x23e   :  { %948 = vmatprep.mubr.f32.mxu0 %v388_v62 }
 0x23f   :  { %949 = vmatmul.mubr.f32.gmra.mrb[18].mxu0 %v894_v60 }
 0x240   :  { %v897_v58 = vpop.f32.mrb[4].mxu1 }
 0x241   :  { %v398_v63 = vpop.f32.mrb[5].mxu1 }
 0x242   :  { %951 = vmatprep.mubr.f32.mxu0 %v398_v63 }
 0x243   :  { %952 = vmatmul.mubr.f32.gmra.mrb[20].mxu0 %v897_v58 }
 0x244   :  { %v900_v1 = vpop.f32.mrb[6].mxu1 }
 0x245   :  { %v408_v2 = vpop.f32.mrb[7].mxu1 }
 0x246   :  { %954 = vmatprep.mubr.f32.mxu0 %v408_v2 }
 0x247   :  { %955 = vmatmul.mubr.f32.gmra.mrb[22].mxu0 %v900_v1 }
 0x248   :  { %v903_v61 = vpop.f32.mrb[8].mxu1 }
 0x249   :  { %v418_v3 = vpop.f32.mrb[9].mxu1 }
 0x24a   :  { %957 = vmatprep.mubr.f32.mxu1 %v418_v3 }
 0x24b   :  { %958 = vmatmul.mubr.f32.vlgmr.msra.gmra.mrb[16].mxu1 %v903_v61 }
 0x24c   :  { %v906_v0 = vpop.f32.mrb[10].mxu1 }
 0x24d   :  { %v428_v4 = vpop.f32.mrb[11].mxu1 }
 0x24e   :  { %960 = vmatprep.mubr.f32.mxu1 %v428_v4 }
 0x24f   :  { %961 = vmatmul.mubr.f32.gmra.mrb[18].mxu1 %v906_v0 }
 0x250   :  { %v909_v5 = vpop.f32.mrb[12].mxu1 }
 0x251   :  { %v438_v6 = vpop.f32.mrb[13].mxu1 }
 0x252   :  { %963 = vmatprep.mubr.f32.mxu1 %v438_v6 }
 0x253   :  { %964 = vmatmul.mubr.f32.gmra.mrb[20].mxu1 %v909_v5 }
 0x254   :  { %v912_v7 = vpop.f32.mrb[14].mxu1 }
 0x255   :  { %v448_v8 = vpop.f32.mrb[15].mxu1 }
 0x256   :  { %966 = vmatprep.mubr.f32.mxu1 %v448_v8 }
 0x257   :  { %967 = vmatmul.mubr.f32.gmra.mrb[22].mxu1 %v912_v7 }
 0x30e   :  { %v947_v9 = vpop.f32.mrb[16].mxu0 }
 0x30f   :  { %670 = vst [vmem:[#allocation11 + $0x8] sm:$0xff] %v947_v9  ;;  %v590_v10 = vpop.f32.mrb[17].mxu0 }
 0x310   :  { %669 = vst [vmem:[#allocation11] sm:$0xff] %v590_v10 }
 0x312   :  { %v950_v11 = vpop.f32.mrb[18].mxu0 }
 0x313   :  { %672 = vst [vmem:[#allocation11 + $0x18] sm:$0xff] %v950_v11  ;;  %v600_v12 = vpop.f32.mrb[19].mxu0 }
 0x314   :  { %671 = vst [vmem:[#allocation11 + $0x10] sm:$0xff] %v600_v12 }
 0x316   :  { %v953_v13 = vpop.f32.mrb[20].mxu0 }
 0x317   :  { %674 = vst [vmem:[#allocation11 + $0x28] sm:$0xff] %v953_v13  ;;  %v610_v14 = vpop.f32.mrb[21].mxu0 }
 0x318   :  { %673 = vst [vmem:[#allocation11 + $0x20] sm:$0xff] %v610_v14 }
 0x31a   :  { %v956_v15 = vpop.f32.mrb[22].mxu0 }
 0x31b   :  { %676 = vst [vmem:[#allocation11 + $0x38] sm:$0xff] %v956_v15  ;;  %v620_v16 = vpop.f32.mrb[23].mxu0 }
 0x31c   :  { %675 = vst [vmem:[#allocation11 + $0x30] sm:$0xff] %v620_v16 }
 0x31e   :  { %v959_v17 = vpop.f32.mrb[16].mxu1 }
 0x31f   :  { %678 = vst [vmem:[#allocation11 + $0x48] sm:$0xff] %v959_v17  ;;  %v630_v18 = vpop.f32.mrb[17].mxu1 }
 0x320   :  { %677 = vst [vmem:[#allocation11 + $0x40] sm:$0xff] %v630_v18 }
 0x322   :  { %v962_v19 = vpop.f32.mrb[18].mxu1 }
 0x323   :  { %680 = vst [vmem:[#allocation11 + $0x58] sm:$0xff] %v962_v19  ;;  %v640_v20 = vpop.f32.mrb[19].mxu1 }
 0x324   :  { %679 = vst [vmem:[#allocation11 + $0x50] sm:$0xff] %v640_v20 }
 0x326   :  { %v965_v21 = vpop.f32.mrb[20].mxu1 }
 0x327   :  { %682 = vst [vmem:[#allocation11 + $0x68] sm:$0xff] %v965_v21  ;;  %v650_v22 = vpop.f32.mrb[21].mxu1 }
 0x328   :  { %681 = vst [vmem:[#allocation11 + $0x60] sm:$0xff] %v650_v22 }
 0x32a   :  { %v968_v23 = vpop.f32.mrb[22].mxu1 }
 0x32b   :  { %684 = vst [vmem:[#allocation11 + $0x78] sm:$0xff] %v968_v23  ;;  %v660_v24 = vpop.f32.mrb[23].mxu1 }
 0x32c   :  { %683 = vst [vmem:[#allocation11 + $0x70] sm:$0xff] %v660_v24 }
 0x32d   :  { %1187 = shalt.err (!%p1184_p8)
}
 0x32e   :  { %s1188_s22 = scalar_lea.hbm %s1388_s5, 2048 }
 0x32f   :  { %p1189_p9 = scmp.ne.s32.totalorder %s1388_s5, %s1188_s22  ;;  %p1192_p10 = scmp.lt.u32.totalorder %s1188_s22, %s1388_s5 }
 0x331   :  { %p1194_p11 = pnand %p1192_p10, %p1189_p9 }
 0x333   :  { %1197 = shalt.err (!%p1194_p11)
}
 0x334   :  { %696 = dma.vmem_to_hbm [thread:$0]  %s691_s17, 2048, %s1388_s5, [#allocation5], %s1208_s30, %s1208_s30, %s1209_s6  }
 0x335   :  { %1204 = dma.done.wait [#allocation5], 2048  }
 0x336   :  { %1205 = vsyncadd [#allocation5], 4294965248 }
 0x337   :  { %700 = vsyncpa [#allocation4], 1 }
 0x338   :  { %701 = vsyncpa [#allocation7], 1 }
 0x339   :  { %702 = vsyncpa [#allocation10], 1 }
 0x33a   :  { %703 = vsyncpa [#allocation5], 1 }

</bundles_post_ra>
